<compile_context>
chip_gen: v7x
topology: tpu7x:2x2x1
jax: 0.10.0
libtpu: 0.0.40
codegen_flags: <defaults>
</compile_context>

<pallas_src>
import functools

import jax
import jax.numpy as jnp
from jax.experimental import pallas as pl
from jax.experimental.pallas import tpu as pltpu

LANES = 128        # lane width (last dim of every tile)
SUBLANES = 8       # accumulator rows / f32 sublane tile height
ROW_CHUNK = 128    # rows folded per inner-loop iteration (16 f32 vregs/input)
MAX_TM = 8192      # rows per grid step: 8192*128*4B = 4 MiB per f32 input tile
NCORES = 2         # leading 'parallel' grid axis (v7x megacore); serial elsewhere


def _round_up(x, m):
    return ((x + m - 1) // m) * m


def _dice_partial_kernel(x_ref, t_ref, acc_ref, *, tm, rows):
    """Accumulates per-lane partials of sum(sigmoid(x)*t) and sum(sigmoid(x)+t).

    acc_ref block is (1, 2, 8, 128):
      [0, 0] : per-lane partial of the intersection  sum(s * t)
      [0, 1] : per-lane partial of the denominator   sum(s) + sum(t)
    """
    core = pl.program_id(0)
    step = pl.program_id(1)
    nsteps = pl.num_programs(1)

    @pl.when(step == 0)
    def _():
        acc_ref[...] = jnp.zeros_like(acc_ref)

    blk = core * nsteps + step          # logical row-block index
    nchunks = tm // ROW_CHUNK

    def chunk_sums(c, masked):
        r0 = pl.multiple_of(c * ROW_CHUNK, ROW_CHUNK)
        xf = x_ref[pl.ds(r0, ROW_CHUNK), :].astype(jnp.float32)
        tf = t_ref[pl.ds(r0, ROW_CHUNK), :].astype(jnp.float32)
        # EUP-routed sigmoid: exp + approx reciprocal + one Newton step keeps
        # the divide off the VALU while staying ~f32 accurate.  The clip keeps
        # exp finite (NR never sees inf) and makes padded values well-defined.
        xf = jnp.clip(xf, -30.0, 30.0)
        d = 1.0 + jnp.exp(-xf)                     # EUP exp
        r = pl.reciprocal(d, approx=True)          # EUP rcp
        s = r * (2.0 - d * r)                      # one Newton refinement (VPU)
        num = s * tf
        den = s + tf
        if masked:
            # Zero rows past the real array (ragged last block / clamped
            # duplicate blocks).  jnp.where (select) is NaN-safe wrt garbage.
            rid = blk * tm + r0 + jax.lax.broadcasted_iota(
                jnp.int32, (ROW_CHUNK, 1), 0)
            valid = rid < rows
            num = jnp.where(valid, num, 0.0)
            den = jnp.where(valid, den, 0.0)
        # Fold ROW_CHUNK rows -> 8 rows with vreg-aligned VPU adds (no XLU).
        num8 = num.reshape(ROW_CHUNK // SUBLANES, SUBLANES, LANES).sum(axis=0)
        den8 = den.reshape(ROW_CHUNK // SUBLANES, SUBLANES, LANES).sum(axis=0)
        return num8, den8

    def accumulate(masked):
        def body(c, carry):
            na, da = carry
            n8, d8 = chunk_sums(c, masked)
            return na + n8, da + d8
        zero = jnp.zeros((SUBLANES, LANES), jnp.float32)
        na, da = jax.lax.fori_loop(0, nchunks, body, (zero, zero))
        acc_ref[0, 0] += na
        acc_ref[0, 1] += da

    fully_oob = blk * tm >= rows            # clamped duplicate block: skip all
    needs_mask = (blk + 1) * tm > rows      # block straddles the real end

    @pl.when(jnp.logical_not(needs_mask))   # common case: no mask work at all
    def _():
        accumulate(masked=False)

    @pl.when(jnp.logical_and(needs_mask, jnp.logical_not(fully_oob)))
    def _():
        accumulate(masked=True)


def dice_loss(inputs, targets, smooth=1.0):
    """Pallas TPU implementation of DiceLoss.forward (returns a scalar f32)."""
    x = inputs.reshape(-1)
    t = targets.reshape(-1)
    if x.dtype == jnp.bool_:
        x = x.astype(jnp.int8)
    if t.dtype == jnp.bool_:
        t = t.astype(jnp.int8)
    n = x.shape[0]

    rows = pl.cdiv(n, LANES)
    n_padded = rows * LANES
    if n_padded != n:
        # TODO(synk): a fully pad-free lane-tail path (1-D BlockSpec + element
        # mask) would avoid this copy; only hit when n % 128 != 0.
        pad = n_padded - n
        x = jnp.pad(x, (0, pad), constant_values=-30)   # sigmoid(-30) ~ 1e-13
        t = jnp.pad(t, (0, pad))

    x2 = x.reshape(rows, LANES)
    t2 = t.reshape(rows, LANES)

    # Row-block size: multiple of ROW_CHUNK (also satisfies bf16/int8 sublane
    # tiling), capped at MAX_TM to amortize the ~0.35us per-step overhead.
    tm = min(MAX_TM, _round_up(rows, ROW_CHUNK))
    grid_steps = pl.cdiv(rows, tm)

    ncores = NCORES if grid_steps >= 2 else 1
    spc = pl.cdiv(grid_steps, ncores)       # row blocks per core
    last_blk = grid_steps - 1

    def in_map(c, i):
        # Clamp so out-of-range logical blocks (odd split) map to the last real
        # block: the pipeline elides the duplicate DMA and the kernel skips the
        # compute via the fully_oob guard.
        return (jnp.minimum(c * spc + i, last_blk), 0)

    kernel = functools.partial(_dice_partial_kernel, tm=tm, rows=rows)

    acc = pl.pallas_call(
        kernel,
        out_shape=jax.ShapeDtypeStruct((ncores, 2, SUBLANES, LANES),
                                       jnp.float32),
        grid_spec=pltpu.PrefetchScalarGridSpec(
            num_scalar_prefetch=0,
            grid=(ncores, spc),
            in_specs=[
                pl.BlockSpec((tm, LANES), in_map),
                pl.BlockSpec((tm, LANES), in_map),
            ],
            # Per-core resident accumulator block, written back once per core.
            out_specs=pl.BlockSpec((1, 2, SUBLANES, LANES),
                                   lambda c, i: (c, 0, 0, 0)),
        ),
        compiler_params=pltpu.CompilerParams(
            dimension_semantics=("parallel", "arbitrary"),
            vmem_limit_bytes=32 * 1024 * 1024),
    )(x2, t2)

    # Single small cross-lane reduction in JAX (~8 KiB of partials).
    intersection = jnp.sum(acc[:, 0])
    denom = jnp.sum(acc[:, 1])              # == sum(sigmoid(x)) + sum(t)
    dice = (2.0 * intersection + smooth) / (denom + smooth)
    return 1.0 - dice


def _ref_dice(x, t, smooth=1.0):
    s = jax.nn.sigmoid(x.astype(jnp.float32)).reshape(-1)
    tt = t.astype(jnp.float32).reshape(-1)
    inter = jnp.sum(s * tt)
    return 1.0 - (2.0 * inter + smooth) / (jnp.sum(s) + jnp.sum(tt) + smooth)


if __name__ == "__main__":
    key = jax.random.PRNGKey(0)
    k1, k2, k3, k4, k5, k6 = jax.random.split(key, 6)

    # Small segmentation-style logits/targets (NCHW), as the module implies.
    inputs = jax.random.normal(k1, (2, 4, 16, 16), dtype=jnp.float32)
    targets = (jax.random.uniform(k2, (2, 4, 16, 16)) > 0.5).astype(jnp.float32)
    loss = jax.block_until_ready(dice_loss(inputs, targets, smooth=1.0))
    ref = _ref_dice(inputs, targets)
    assert jnp.allclose(loss, ref, atol=5e-5), (loss, ref)

    # Non-lane-aligned size: exercises the sub-lane pad + ragged-block mask.
    x2 = jax.random.normal(k3, (1, 3, 301, 300), dtype=jnp.float32)
    t2 = (jax.random.uniform(k4, (1, 3, 301, 300)) > 0.5).astype(jnp.float32)
    loss2 = jax.block_until_ready(dice_loss(x2, t2, smooth=1.0))
    ref2 = _ref_dice(x2, t2)
    assert jnp.allclose(loss2, ref2, atol=1e-4), (loss2, ref2)

    # Multi-block grid with an odd block count and bf16 logits: exercises the
    # two-core split, the clamped duplicate block and the ragged last block.
    x3 = jax.random.normal(k5, (3, 8, 320, 320), dtype=jnp.bfloat16)
    t3 = (jax.random.uniform(k6, (3, 8, 320, 320)) > 0.5).astype(jnp.float32)
    loss3 = jax.block_until_ready(dice_loss(x3, t3, smooth=1.0))
    ref3 = _ref_dice(x3, t3)
    assert jnp.allclose(loss3, ref3, atol=5e-4), (loss3, ref3)

    print("KERNEL_OK")
</pallas_src>

<mosaic_0001>
module attributes {stable_mosaic.version = 11 : i64} {
  func.func @_dice_partial_kernel(%arg0: i32, %arg1: i32, %arg2: memref<128x128xf32, #tpu.memory_space<vmem>>, %arg3: memref<128x128xf32, #tpu.memory_space<vmem>>, %arg4: memref<1x2x8x128xf32, #tpu.memory_space<vmem>>) attributes {dimension_semantics = [#tpu.dimension_semantics<parallel>, #tpu.dimension_semantics<arbitrary>], iteration_bounds = array<i64: 1, 1>, scalar_prefetch = 0 : i64, scratch_operands = 0 : i64, tpu.core_type = #tpu.core_type<tc>, window_params = [{transform_indices = @transform_0, window_bounds = array<i64: 128, 128>}, {transform_indices = @transform_1, window_bounds = array<i64: 128, 128>}, {transform_indices = @transform_2, window_bounds = array<i64: 1, 2, 8, 128>}]} {
    %c0_i32 = arith.constant 0 : i32
    %0 = arith.cmpi eq, %arg1, %c0_i32 : i32
    %1 = arith.extui %0 : i1 to i32
    %c0_i32_0 = arith.constant 0 : i32
    %2 = arith.cmpi ne, %1, %c0_i32_0 : i32
    scf.if %2 {
      %cst = arith.constant 0.000000e+00 : f32
      %17 = vector.broadcast %cst : f32 to vector<1x2x8x128xf32>
      %c0 = arith.constant 0 : index
      %c0_7 = arith.constant 0 : index
      %c0_8 = arith.constant 0 : index
      %c0_9 = arith.constant 0 : index
      %18 = vector.load %arg4[%c0, %c0_7, %c0_8, %c0_9] : memref<1x2x8x128xf32, #tpu.memory_space<vmem>>, vector<1x2x8x128xf32>
      tpu.vector_store %arg4[%c0, %c0_7, %c0_8, %c0_9], %17 {strides = array<i32>} : memref<1x2x8x128xf32, #tpu.memory_space<vmem>>, vector<1x2x8x128xf32>,
    } else {
    }
    %c1_i32 = arith.constant 1 : i32
    %3 = arith.muli %arg0, %c1_i32 : i32
    %4 = arith.addi %3, %arg1 : i32
    %c128_i32 = arith.constant 128 : i32
    %5 = arith.muli %4, %c128_i32 : i32
    %c16_i32 = arith.constant 16 : i32
    %6 = arith.cmpi sge, %5, %c16_i32 : i32
    %c1_i32_1 = arith.constant 1 : i32
    %7 = arith.addi %4, %c1_i32_1 : i32
    %c128_i32_2 = arith.constant 128 : i32
    %8 = arith.muli %7, %c128_i32_2 : i32
    %c16_i32_3 = arith.constant 16 : i32
    %9 = arith.cmpi sgt, %8, %c16_i32_3 : i32
    %true = arith.constant true
    %10 = arith.xori %9, %true : i1
    %11 = arith.extui %10 : i1 to i32
    %c0_i32_4 = arith.constant 0 : i32
    %12 = arith.cmpi ne, %11, %c0_i32_4 : i32
    scf.if %12 {
      %cst = arith.constant 0.000000e+00 : f32
      %17 = vector.broadcast %cst : f32 to vector<8x128xf32>
      %c0_i32_7 = arith.constant 0 : i32
      %c128_i32_8 = arith.constant 128 : i32
      %18 = arith.muli %c0_i32_7, %c128_i32_8 : i32
      %19 = tpu.assume_multiple %18, 128 : i32
      %20 = arith.index_cast %19 : i32 to index
      %c0 = arith.constant 0 : index
      %21 = vector.load %arg2[%20, %c0] : memref<128x128xf32, #tpu.memory_space<vmem>>, vector<128x128xf32>
      %22 = arith.index_cast %19 : i32 to index
      %c0_9 = arith.constant 0 : index
      %23 = vector.load %arg3[%22, %c0_9] : memref<128x128xf32, #tpu.memory_space<vmem>>, vector<128x128xf32>
      %cst_10 = arith.constant -3.000000e+01 : f32
      %cst_11 = arith.constant 3.000000e+01 : f32
      %24 = vector.broadcast %cst_10 : f32 to vector<128x128xf32>
      %25 = arith.maximumf %24, %21 : vector<128x128xf32>
      %26 = vector.broadcast %cst_11 : f32 to vector<128x128xf32>
      %27 = arith.minimumf %26, %25 : vector<128x128xf32>
      %cst_12 = arith.constant 0.000000e+00 : f32
      %28 = vector.broadcast %cst_12 : f32 to vector<128x128xf32>
      %29 = arith.subf %28, %27 : vector<128x128xf32>
      %30 = math.exp %29 : vector<128x128xf32>
      %cst_13 = arith.constant 1.000000e+00 : f32
      %31 = vector.broadcast %cst_13 : f32 to vector<128x128xf32>
      %32 = arith.addf %31, %30 : vector<128x128xf32>
      %33 = tpu.reciprocal %32 {approx = true} : vector<128x128xf32> -> vector<128x128xf32>
      %34 = arith.mulf %32, %33 : vector<128x128xf32>
      %cst_14 = arith.constant 2.000000e+00 : f32
      %35 = vector.broadcast %cst_14 : f32 to vector<128x128xf32>
      %36 = arith.subf %35, %34 : vector<128x128xf32>
      %37 = arith.mulf %33, %36 : vector<128x128xf32>
      %38 = arith.mulf %37, %23 : vector<128x128xf32>
      %39 = arith.addf %37, %23 : vector<128x128xf32>
      %40 = vector.shape_cast %38 : vector<128x128xf32> to vector<16x8x128xf32>
      %cst_15 = arith.constant dense<0.000000e+00> : vector<8x128xf32>
      %41 = vector.multi_reduction <add>, %40, %cst_15 [0] : vector<16x8x128xf32> to vector<8x128xf32>
      %42 = vector.shape_cast %39 : vector<128x128xf32> to vector<16x8x128xf32>
      %cst_16 = arith.constant dense<0.000000e+00> : vector<8x128xf32>
      %43 = vector.multi_reduction <add>, %42, %cst_16 [0] : vector<16x8x128xf32> to vector<8x128xf32>
      %44 = arith.addf %17, %41 : vector<8x128xf32>
      %45 = arith.addf %17, %43 : vector<8x128xf32>
      %c1_i32_17 = arith.constant 1 : i32
      %c0_18 = arith.constant 0 : index
      %c0_19 = arith.constant 0 : index
      %c0_20 = arith.constant 0 : index
      %c0_21 = arith.constant 0 : index
      %46 = vector.load %arg4[%c0_18, %c0_19, %c0_20, %c0_21] : memref<1x2x8x128xf32, #tpu.memory_space<vmem>>, vector<1x1x8x128xf32>
      %47 = vector.shape_cast %46 : vector<1x1x8x128xf32> to vector<8x128xf32>
      %48 = arith.addf %47, %44 : vector<8x128xf32>
      %c0_22 = arith.constant 0 : index
      %c0_23 = arith.constant 0 : index
      %c0_24 = arith.constant 0 : index
      %c0_25 = arith.constant 0 : index
      %49 = vector.load %arg4[%c0_22, %c0_23, %c0_24, %c0_25] : memref<1x2x8x128xf32, #tpu.memory_space<vmem>>, vector<1x1x8x128xf32>
      %50 = vector.shape_cast %49 : vector<1x1x8x128xf32> to vector<8x128xf32>
      %51 = vector.shape_cast %48 : vector<8x128xf32> to vector<1x1x8x128xf32>
      tpu.vector_store %arg4[%c0_22, %c0_23, %c0_24, %c0_25], %51 {strides = array<i32>} : memref<1x2x8x128xf32, #tpu.memory_space<vmem>>, vector<1x1x8x128xf32>,
      %c0_26 = arith.constant 0 : index
      %c1 = arith.constant 1 : index
      %c0_27 = arith.constant 0 : index
      %c0_28 = arith.constant 0 : index
      %52 = vector.load %arg4[%c0_26, %c1, %c0_27, %c0_28] : memref<1x2x8x128xf32, #tpu.memory_space<vmem>>, vector<1x1x8x128xf32>
      %53 = vector.shape_cast %52 : vector<1x1x8x128xf32> to vector<8x128xf32>
      %54 = arith.addf %53, %45 : vector<8x128xf32>
      %c0_29 = arith.constant 0 : index
      %c1_30 = arith.constant 1 : index
      %c0_31 = arith.constant 0 : index
      %c0_32 = arith.constant 0 : index
      %55 = vector.load %arg4[%c0_29, %c1_30, %c0_31, %c0_32] : memref<1x2x8x128xf32, #tpu.memory_space<vmem>>, vector<1x1x8x128xf32>
      %56 = vector.shape_cast %55 : vector<1x1x8x128xf32> to vector<8x128xf32>
      %57 = vector.shape_cast %54 : vector<8x128xf32> to vector<1x1x8x128xf32>
      tpu.vector_store %arg4[%c0_29, %c1_30, %c0_31, %c0_32], %57 {strides = array<i32>} : memref<1x2x8x128xf32, #tpu.memory_space<vmem>>, vector<1x1x8x128xf32>,
    } else {
    }
    %true_5 = arith.constant true
    %13 = arith.xori %6, %true_5 : i1
    %14 = arith.andi %9, %13 : i1
    %15 = arith.extui %14 : i1 to i32
    %c0_i32_6 = arith.constant 0 : i32
    %16 = arith.cmpi ne, %15, %c0_i32_6 : i32
    scf.if %16 {
      %cst = arith.constant 0.000000e+00 : f32
      %17 = vector.broadcast %cst : f32 to vector<8x128xf32>
      %c0_i32_7 = arith.constant 0 : i32
      %c128_i32_8 = arith.constant 128 : i32
      %18 = arith.muli %c0_i32_7, %c128_i32_8 : i32
      %19 = tpu.assume_multiple %18, 128 : i32
      %20 = arith.index_cast %19 : i32 to index
      %c0 = arith.constant 0 : index
      %21 = vector.load %arg2[%20, %c0] : memref<128x128xf32, #tpu.memory_space<vmem>>, vector<128x128xf32>
      %22 = arith.index_cast %19 : i32 to index
      %c0_9 = arith.constant 0 : index
      %23 = vector.load %arg3[%22, %c0_9] : memref<128x128xf32, #tpu.memory_space<vmem>>, vector<128x128xf32>
      %cst_10 = arith.constant -3.000000e+01 : f32
      %cst_11 = arith.constant 3.000000e+01 : f32
      %24 = vector.broadcast %cst_10 : f32 to vector<128x128xf32>
      %25 = arith.maximumf %24, %21 : vector<128x128xf32>
      %26 = vector.broadcast %cst_11 : f32 to vector<128x128xf32>
      %27 = arith.minimumf %26, %25 : vector<128x128xf32>
      %cst_12 = arith.constant 0.000000e+00 : f32
      %28 = vector.broadcast %cst_12 : f32 to vector<128x128xf32>
      %29 = arith.subf %28, %27 : vector<128x128xf32>
      %30 = math.exp %29 : vector<128x128xf32>
      %cst_13 = arith.constant 1.000000e+00 : f32
      %31 = vector.broadcast %cst_13 : f32 to vector<128x128xf32>
      %32 = arith.addf %31, %30 : vector<128x128xf32>
      %33 = tpu.reciprocal %32 {approx = true} : vector<128x128xf32> -> vector<128x128xf32>
      %34 = arith.mulf %32, %33 : vector<128x128xf32>
      %cst_14 = arith.constant 2.000000e+00 : f32
      %35 = vector.broadcast %cst_14 : f32 to vector<128x128xf32>
      %36 = arith.subf %35, %34 : vector<128x128xf32>
      %37 = arith.mulf %33, %36 : vector<128x128xf32>
      %38 = arith.mulf %37, %23 : vector<128x128xf32>
      %39 = arith.addf %37, %23 : vector<128x128xf32>
      %c128_i32_15 = arith.constant 128 : i32
      %40 = arith.muli %4, %c128_i32_15 : i32
      %41 = arith.addi %40, %19 : i32
      %42 = tpu.iota {dimensions = array<i32: 0>} : vector<128x1xi32>
      %43 = vector.broadcast %41 : i32 to vector<128x1xi32>
      %44 = arith.addi %43, %42 : vector<128x1xi32>
      %c16_i32_16 = arith.constant 16 : i32
      %45 = vector.broadcast %c16_i32_16 : i32 to vector<128x1xi32>
      %46 = arith.cmpi slt, %44, %45 : vector<128x1xi32>
      %cst_17 = arith.constant 0.000000e+00 : f32
      %47 = vector.shape_cast %46 : vector<128x1xi1> to vector<128x1xi1>
      %48 = vector.broadcast %47 : vector<128x1xi1> to vector<128x128xi1>
      %49 = vector.broadcast %cst_17 : f32 to vector<128x128xf32>
      %50 = arith.select %48, %38, %49 : vector<128x128xi1>, vector<128x128xf32>
      %cst_18 = arith.constant 0.000000e+00 : f32
      %51 = vector.shape_cast %46 : vector<128x1xi1> to vector<128x1xi1>
      %52 = vector.broadcast %51 : vector<128x1xi1> to vector<128x128xi1>
      %53 = vector.broadcast %cst_18 : f32 to vector<128x128xf32>
      %54 = arith.select %52, %39, %53 : vector<128x128xi1>, vector<128x128xf32>
      %55 = vector.shape_cast %50 : vector<128x128xf32> to vector<16x8x128xf32>
      %cst_19 = arith.constant dense<0.000000e+00> : vector<8x128xf32>
      %56 = vector.multi_reduction <add>, %55, %cst_19 [0] : vector<16x8x128xf32> to vector<8x128xf32>
      %57 = vector.shape_cast %54 : vector<128x128xf32> to vector<16x8x128xf32>
      %cst_20 = arith.constant dense<0.000000e+00> : vector<8x128xf32>
      %58 = vector.multi_reduction <add>, %57, %cst_20 [0] : vector<16x8x128xf32> to vector<8x128xf32>
      %59 = arith.addf %17, %56 : vector<8x128xf32>
      %60 = arith.addf %17, %58 : vector<8x128xf32>
      %c1_i32_21 = arith.constant 1 : i32
      %c0_22 = arith.constant 0 : index
      %c0_23 = arith.constant 0 : index
      %c0_24 = arith.constant 0 : index
      %c0_25 = arith.constant 0 : index
      %61 = vector.load %arg4[%c0_22, %c0_23, %c0_24, %c0_25] : memref<1x2x8x128xf32, #tpu.memory_space<vmem>>, vector<1x1x8x128xf32>
      %62 = vector.shape_cast %61 : vector<1x1x8x128xf32> to vector<8x128xf32>
      %63 = arith.addf %62, %59 : vector<8x128xf32>
      %c0_26 = arith.constant 0 : index
      %c0_27 = arith.constant 0 : index
      %c0_28 = arith.constant 0 : index
      %c0_29 = arith.constant 0 : index
      %64 = vector.load %arg4[%c0_26, %c0_27, %c0_28, %c0_29] : memref<1x2x8x128xf32, #tpu.memory_space<vmem>>, vector<1x1x8x128xf32>
      %65 = vector.shape_cast %64 : vector<1x1x8x128xf32> to vector<8x128xf32>
      %66 = vector.shape_cast %63 : vector<8x128xf32> to vector<1x1x8x128xf32>
      tpu.vector_store %arg4[%c0_26, %c0_27, %c0_28, %c0_29], %66 {strides = array<i32>} : memref<1x2x8x128xf32, #tpu.memory_space<vmem>>, vector<1x1x8x128xf32>,
      %c0_30 = arith.constant 0 : index
      %c1 = arith.constant 1 : index
      %c0_31 = arith.constant 0 : index
      %c0_32 = arith.constant 0 : index
      %67 = vector.load %arg4[%c0_30, %c1, %c0_31, %c0_32] : memref<1x2x8x128xf32, #tpu.memory_space<vmem>>, vector<1x1x8x128xf32>
      %68 = vector.shape_cast %67 : vector<1x1x8x128xf32> to vector<8x128xf32>
      %69 = arith.addf %68, %60 : vector<8x128xf32>
      %c0_33 = arith.constant 0 : index
      %c1_34 = arith.constant 1 : index
      %c0_35 = arith.constant 0 : index
      %c0_36 = arith.constant 0 : index
      %70 = vector.load %arg4[%c0_33, %c1_34, %c0_35, %c0_36] : memref<1x2x8x128xf32, #tpu.memory_space<vmem>>, vector<1x1x8x128xf32>
      %71 = vector.shape_cast %70 : vector<1x1x8x128xf32> to vector<8x128xf32>
      %72 = vector.shape_cast %69 : vector<8x128xf32> to vector<1x1x8x128xf32>
      tpu.vector_store %arg4[%c0_33, %c1_34, %c0_35, %c0_36], %72 {strides = array<i32>} : memref<1x2x8x128xf32, #tpu.memory_space<vmem>>, vector<1x1x8x128xf32>,
    } else {
    }
    return
  }
  func.func @transform_0(%arg0: i32, %arg1: i32) -> (i32, i32) {
    %c1_i32 = arith.constant 1 : i32
    %0 = arith.muli %arg0, %c1_i32 : i32
    %1 = arith.addi %0, %arg1 : i32
    %c0_i32 = arith.constant 0 : i32
    %2 = arith.minsi %1, %c0_i32 : i32
    %c0_i32_0 = arith.constant 0 : i32
    %c0_i32_1 = arith.constant 0 : i32
    return %2, %c0_i32_0 : i32, i32
  }
  func.func @transform_1(%arg0: i32, %arg1: i32) -> (i32, i32) {
    %c1_i32 = arith.constant 1 : i32
    %0 = arith.muli %arg0, %c1_i32 : i32
    %1 = arith.addi %0, %arg1 : i32
    %c0_i32 = arith.constant 0 : i32
    %2 = arith.minsi %1, %c0_i32 : i32
    %c0_i32_0 = arith.constant 0 : i32
    %c0_i32_1 = arith.constant 0 : i32
    return %2, %c0_i32_0 : i32, i32
  }
  func.func @transform_2(%arg0: i32, %arg1: i32) -> (i32, i32, i32, i32) {
    %c0_i32 = arith.constant 0 : i32
    %c0_i32_0 = arith.constant 0 : i32
    %c0_i32_1 = arith.constant 0 : i32
    %c0_i32_2 = arith.constant 0 : i32
    return %arg0, %c0_i32, %c0_i32_0, %c0_i32_1 : i32, i32, i32, i32
  }
}

</mosaic_0001>

<bundles_post_ra>
// kernel: tpu_custom_call.1
= control target key start
LH: loop header
LB: loop body
LE: loop exit
PB: predicated region body
PF: predicated region fallthrough
CT: control target
= control target key end

     0   :  { %7 = vsyncpa [#allocation3], 0  ;;  %s938_s0 = inlined_call_operand.hbm [shape: f32[16,128], index: 0, kind: input, shape index: {}]   ;;  %s939_s1 = inlined_call_operand.hbm [shape: f32[16,128], index: 1, kind: input, shape index: {}]   ;;  %s940_s2 = inlined_call_operand.hbm [shape: f32[1,2,8,128], index: 2, kind: output, shape index: {}]  }
   0x1   :  { %8 = vsyncpa [#allocation6], 0 }
   0x2   :  { %9 = vsyncpa [#allocation4], 0 }
   0x3   :  { %20 = vsyncadd [#allocation3], 1792  ;;  %s873_s9 = smov [#allocation2]   ;;  %s801_s13 = scalar_lea.hbm %s938_s0, 256 }
   0x4   :  { %s25_s10 = sshll.u32 %s873_s9, 4  ;;  %p802_p0 = scmp.ne.s32.totalorder %s938_s0, %s801_s13  ;;  %s26_s10 = int_to_ptr.vmem [resolvable:$true] %s25_s10 }
   0x5   :  { %p805_p1 = scmp.lt.u32.totalorder %s801_s13, %s938_s0 }
   0x7   :  { %p807_p2 = pnand %p805_p1, %p802_p0 }
   0x9   :  { %810 = shalt.err (!%p807_p2)
}
   0xa   :  { %s811_s18 = scalar_lea.vmem %s26_s10, 256  ;;  %s815_s19 = scalar_lea.vmem %s26_s10, 2048 }
   0xb   :  { %p812_p3 = scmp.ne.s32.totalorder %s26_s10, %s811_s18  ;;  %p816_p4 = scmp.lt.s32.totalorder %s26_s10, %s26_s10 }
   0xc   :  { %p817_p5 = scmp.lt.s32.totalorder %s815_s19, %s811_s18 }
   0xe   :  { %p818_p6 = por %p817_p5, %p816_p4 }
  0x10   :  { %p819_p7 = pnand %p818_p6, %p812_p3 }
  0x12   :  { %822 = shalt.err (!%p819_p7)
}
  0x13   :  { %s874_s20 = smov 128   ;;  %s875_s21 = smov 8  }
  0x14   :  { %31 = dma.hbm_to_vmem [thread:$0]  %s938_s0, 256, %s26_s10, [#allocation3], %s874_s20, %s874_s20, %s875_s21  }
  0x15   :  { %42 = vsyncadd [#allocation6], 1792  ;;  %s876_s24 = smov [#allocation5]   ;;  %s823_s28 = scalar_lea.hbm %s939_s1, 256 }
  0x16   :  { %s47_s25 = sshll.u32 %s876_s24, 4  ;;  %p824_p8 = scmp.ne.s32.totalorder %s939_s1, %s823_s28  ;;  %s48_s25 = int_to_ptr.vmem [resolvable:$true] %s47_s25 }
  0x17   :  { %p827_p9 = scmp.lt.u32.totalorder %s823_s28, %s939_s1 }
  0x19   :  { %p829_p10 = pnand %p827_p9, %p824_p8 }
  0x1b   :  { %832 = shalt.err (!%p829_p10)
}
  0x1c   :  { %s833_s5 = scalar_lea.vmem %s48_s25, 256  ;;  %s837_s0 = scalar_lea.vmem %s48_s25, 2048 }
  0x1d   :  { %p834_p11 = scmp.ne.s32.totalorder %s48_s25, %s833_s5  ;;  %p838_p12 = scmp.lt.s32.totalorder %s48_s25, %s48_s25 }
  0x1e   :  { %p839_p13 = scmp.lt.s32.totalorder %s837_s0, %s833_s5 }
  0x20   :  { %p840_p0 = por %p839_p13, %p838_p12 }
  0x22   :  { %p841_p1 = pnand %p840_p0, %p834_p11 }
  0x24   :  { %844 = shalt.err (!%p841_p1)
}
  0x25   :  { %53 = dma.hbm_to_vmem [thread:$0]  %s939_s1, 256, %s48_s25, [#allocation6], %s874_s20, %s874_s20, %s875_s21  }
  0x26   :  { %867 = dma.done.wait [#allocation3], 2048  }
  0x27   :  { %868 = vsyncadd [#allocation3], 4294965248 }
  0x28   :  { %869 = dma.done.wait [#allocation6], 2048  }
  0x29   :  { %870 = vsyncadd [#allocation6], 4294965248  ;;  %v355_v0 = vld [vmem:[#allocation2] sm:$0xff]  ;;  %v356_v1 = vld [vmem:[#allocation2 + $0x8] sm:$0xff]  ;;  %s877_s1 = smov [#allocation7]  }
  0x2a   :  { %v771_v2 = vclamps-f32 %v355_v0, 30.0  ;;  %v772_v3 = vclamps-f32 %v356_v1, 30.0  ;;  %v371_v17 = vld [vmem:[#allocation5] sm:$0xff]  ;;  %v372_v19 = vld [vmem:[#allocation5 + $0x8] sm:$0xff]  ;;  %s738_s8 = sshll.u32 %s877_s1, 4  ;;  %s739_s8 = int_to_ptr.vmem [resolvable:$true] %s738_s8 }
  0x2b   :  { %s845_s9 = scalar_lea.vmem %s739_s8, 256  ;;  %p850_p3 = scmp.lt.s32.totalorder %s739_s8, %s739_s8 }
  0x2c   :  { %v419_v4 = vsub.f32 0.0, %v771_v2  ;;  %v420_v5 = vsub.f32 0.0, %v772_v3  ;;  %p846_p2 = scmp.ne.s32.totalorder %s739_s8, %s845_s9  ;;  %p851_p4 = scmp.lt.s32.totalorder %s845_s9, %s845_s9 }
  0x2e   :  { %v435_v6 = vmul.f32 1.442695, %v419_v4  ;;  %v437_v7 = vmul.f32 1.442695, %v420_v5  ;;  %p852_p5 = por %p851_p4, %p850_p3 }
  0x30   :  { %793 = vpow2.f32 %v435_v6  ;;  %p853_p6 = pnand %p852_p5, %p846_p2 }
  0x31   :  { %795 = vpow2.f32 %v437_v7 }
  0x3a   :  { %v794_v8 = vpop.eup %793 }
  0x3b   :  { %v796_v9 = vpop.eup %795  ;;  %v467_v10 = vadd.f32 1.0, %v794_v8 }
  0x3c   :  { %v468_v11 = vadd.f32 1.0, %v796_v9 }
  0x3d   :  { %797 = vrcp.f32 %v467_v10 }
  0x3e   :  { %799 = vrcp.f32 %v468_v11 }
  0x47   :  { %v798_v12 = vpop.eup %797 }
  0x48   :  { %v800_v13 = vpop.eup %799  ;;  %v499_v14 = vmul.f32 %v798_v12, %v467_v10 }
  0x49   :  { %v500_v15 = vmul.f32 %v800_v13, %v468_v11 }
  0x4a   :  { %v515_v16 = vsub.f32 2.0, %v499_v14 }
  0x4b   :  { %v516_v18 = vsub.f32 2.0, %v500_v15 }
  0x4c   :  { %v531_v20 = vmul.f32 %v798_v12, %v515_v16 }
  0x4d   :  { %v532_v21 = vmul.f32 %v800_v13, %v516_v18 }
  0x4e   :  { %v547_v22 = vmul.f32 %v531_v20, %v371_v17  ;;  %v563_v23 = vadd.f32 %v531_v20, %v371_v17 }
  0x4f   :  { %v548_v24 = vmul.f32 %v532_v21, %v372_v19  ;;  %v564_v25 = vadd.f32 %v532_v21, %v372_v19 }
  0x51   :  { %v694_v26 = vadd.f32 %v548_v24, %v547_v22  ;;  %v709_v27 = vadd.f32 %v564_v25, %v563_v23 }
  0x53   :  { %728 = vst [vmem:[#allocation7] sm:$0xff] %v694_v26  ;;  %732 = vst [vmem:[#allocation7 + $0x8] sm:$0xff] %v709_v27 }
  0x54   :  { %856 = shalt.err (!%p853_p6)
}
  0x55   :  { %s857_s12 = scalar_lea.hbm %s940_s2, 256 }
  0x56   :  { %p858_p7 = scmp.ne.s32.totalorder %s940_s2, %s857_s12  ;;  %p861_p8 = scmp.lt.u32.totalorder %s857_s12, %s940_s2 }
  0x58   :  { %p863_p9 = pnand %p861_p8, %p858_p7 }
  0x5a   :  { %866 = shalt.err (!%p863_p9)
}
  0x5b   :  { %744 = dma.vmem_to_hbm [thread:$0]  %s739_s8, 256, %s940_s2, [#allocation4], %s874_s20, %s874_s20, %s875_s21  }
  0x5c   :  { %871 = dma.done.wait [#allocation4], 256  }
  0x5d   :  { %872 = vsyncadd [#allocation4], 4294967040 }
  0x5e   :  { %748 = vsyncpa [#allocation3], 1 }
  0x5f   :  { %749 = vsyncpa [#allocation6], 1 }
  0x60   :  { %750 = vsyncpa [#allocation4], 1 }

</bundles_post_ra>
